<compile_context>
chip_gen: v6e
topology: v6e:2x2x1
jax: 0.10.0
libtpu: 0.0.40
codegen_flags: <defaults>
</compile_context>

<pallas_src>
import jax
import jax.numpy as jnp
from jax.experimental import pallas as pl
from jax.experimental.pallas import tpu as pltpu

_LANE = 1024            # slab width: multiple of 128 -> lane-dense, unmasked stores
_BLOCK_BYTES = 4 << 20  # ~4 MiB per block; 2 arrays x 2 buffers = 16 MiB VMEM


def _h_swish_kernel(x_ref, o_ref):
    x = x_ref[...]
    # relu6(x + 3) / 6  ==  clip(x + 3, 0, 6) * (1/6), computed in native dtype
    hs = jnp.clip(x + 3.0, 0.0, 6.0) * (1.0 / 6.0)
    o_ref[...] = (x * hs).astype(o_ref.dtype)


def h_swish(x: jax.Array) -> jax.Array:
    """Elementwise hard-swish. Accepts any shape (NCHW expected)."""
    orig_shape = x.shape
    dtype = x.dtype
    n = x.size

    itemsize = jnp.dtype(dtype).itemsize
    # minimum packed sublane granularity: f32 -> 8, bf16/f16 -> 16, int8/fp8 -> 32
    sub = {4: 8, 2: 16, 1: 32}.get(itemsize, 8)
    chunk = _LANE * sub

    # Minimal padding: only up to the next (sub * lane) chunk.  For typical
    # conv activations N*C*H*W is already a multiple of this -> no extra copy.
    padded = pl.cdiv(n, chunk) * chunk
    xf = x.reshape(-1)
    if padded != n:
        xf = jnp.pad(xf, (0, padded - n))
    rows = padded // _LANE
    x2d = xf.reshape(rows, _LANE)

    # Tile rows so each block is ~_BLOCK_BYTES, rounded down to the sublane
    # granularity.  No divisibility fallback: the ragged last block (if any)
    # is masked by Pallas.
    tr = (_BLOCK_BYTES // (_LANE * itemsize)) // sub * sub
    tr = max(sub, min(tr, rows))
    grid = (pl.cdiv(rows, tr),)

    out2d = pl.pallas_call(
        _h_swish_kernel,
        out_shape=jax.ShapeDtypeStruct((rows, _LANE), dtype),
        grid_spec=pltpu.PrefetchScalarGridSpec(
            num_scalar_prefetch=0,
            grid=grid,
            in_specs=[pl.BlockSpec((tr, _LANE), lambda i: (i, 0))],
            out_specs=pl.BlockSpec((tr, _LANE), lambda i: (i, 0)),
        ),
        compiler_params=pltpu.CompilerParams(
            dimension_semantics=("parallel",),
            vmem_limit_bytes=32 << 20,
        ),
    )(x2d)

    if padded != n:
        return out2d.reshape(-1)[:n].reshape(orig_shape)
    return out2d.reshape(orig_shape)


def _h_swish_ref(x):
    return x * jnp.clip(x + 3.0, 0.0, 6.0) / 6.0


if __name__ == "__main__":
    key = jax.random.PRNGKey(0)

    # Small NCHW input matching the PyTorch module's conv conventions.
    x = jax.random.normal(key, (2, 4, 16, 16), dtype=jnp.float32) * 4.0
    y = h_swish(x)
    jax.block_until_ready(y)
    y_ref = _h_swish_ref(x)
    assert y.shape == x.shape and y.dtype == x.dtype
    assert jnp.allclose(y, y_ref, atol=1e-6, rtol=1e-6)

    # Larger activation-like shape: exercises the multi-block grid and the
    # ragged (masked) last-block path (4704 rows, tr = 1024, grid = 5).
    x2 = jax.random.normal(jax.random.PRNGKey(1), (4, 96, 112, 112),
                           dtype=jnp.float32)
    y2 = h_swish(x2)
    jax.block_until_ready(y2)
    assert jnp.allclose(y2, _h_swish_ref(x2), atol=1e-6, rtol=1e-6)

    print("KERNEL_OK")
</pallas_src>

<mosaic_0001>
module attributes {stable_mosaic.version = 11 : i64} {
  func.func @_h_swish_kernel(%arg0: i32, %arg1: memref<8x1024xf32, #tpu.memory_space<vmem>>, %arg2: memref<8x1024xf32, #tpu.memory_space<vmem>>) attributes {dimension_semantics = [#tpu.dimension_semantics<parallel>], iteration_bounds = array<i64: 1>, scalar_prefetch = 0 : i64, scratch_operands = 0 : i64, tpu.core_type = #tpu.core_type<tc>, window_params = [{transform_indices = @transform_0, window_bounds = array<i64: 8, 1024>}, {transform_indices = @transform_1, window_bounds = array<i64: 8, 1024>}]} {
    %c0 = arith.constant 0 : index
    %c0_0 = arith.constant 0 : index
    %0 = vector.load %arg1[%c0, %c0_0] : memref<8x1024xf32, #tpu.memory_space<vmem>>, vector<8x1024xf32>
    %cst = arith.constant 3.000000e+00 : f32
    %1 = vector.broadcast %cst : f32 to vector<8x1024xf32>
    %2 = arith.addf %0, %1 : vector<8x1024xf32>
    %cst_1 = arith.constant 0.000000e+00 : f32
    %cst_2 = arith.constant 6.000000e+00 : f32
    %3 = vector.broadcast %cst_1 : f32 to vector<8x1024xf32>
    %4 = arith.maximumf %3, %2 : vector<8x1024xf32>
    %5 = vector.broadcast %cst_2 : f32 to vector<8x1024xf32>
    %6 = arith.minimumf %5, %4 : vector<8x1024xf32>
    %cst_3 = arith.constant 0.166666672 : f32
    %7 = vector.broadcast %cst_3 : f32 to vector<8x1024xf32>
    %8 = arith.mulf %6, %7 : vector<8x1024xf32>
    %9 = arith.mulf %0, %8 : vector<8x1024xf32>
    %c0_4 = arith.constant 0 : index
    %c0_5 = arith.constant 0 : index
    %10 = vector.load %arg2[%c0_4, %c0_5] : memref<8x1024xf32, #tpu.memory_space<vmem>>, vector<8x1024xf32>
    tpu.vector_store %arg2[%c0_4, %c0_5], %9 {strides = array<i32>} : memref<8x1024xf32, #tpu.memory_space<vmem>>, vector<8x1024xf32>,
    return
  }
  func.func @transform_0(%arg0: i32) -> (i32, i32) {
    %c0_i32 = arith.constant 0 : i32
    %c0_i32_0 = arith.constant 0 : i32
    return %arg0, %c0_i32 : i32, i32
  }
  func.func @transform_1(%arg0: i32) -> (i32, i32) {
    %c0_i32 = arith.constant 0 : i32
    %c0_i32_0 = arith.constant 0 : i32
    return %arg0, %c0_i32 : i32, i32
  }
}

</mosaic_0001>

<bundles_post_ra>
// kernel: tpu_custom_call.1
= control target key start
LH: loop header
LB: loop body
LE: loop exit
PB: predicated region body
PF: predicated region fallthrough
CT: control target
= control target key end

     0   :  { %6 = vsyncpa [#allocation3], 0  ;;  %s156_s0 = inlined_call_operand.hbm [shape: f32[8,1024], index: 0, kind: input, shape index: {}]   ;;  %s157_s1 = inlined_call_operand.hbm [shape: f32[8,1024], index: 1, kind: output, shape index: {}]  }
   0x1   :  { %7 = vsyncpa [#allocation4], 0  ;;  %s138_s6 = smov [#allocation2]  }
   0x2   :  { %s14_s7 = sshll.u32 %s138_s6, 4  ;;  %s15_s7 = int_to_ptr.vmem [resolvable:$true] %s14_s7 }
   0x3   :  { %s102_s8 = scalar_lea.vmem %s15_s7, 1024  ;;  %p107_p1 = scmp.lt.s32.totalorder %s15_s7, %s15_s7 }
   0x4   :  { %p103_p0 = scmp.ne.s32.totalorder %s15_s7, %s102_s8  ;;  %p108_p2 = scmp.lt.s32.totalorder %s102_s8, %s102_s8 }
   0x6   :  { %p109_p3 = por %p108_p2, %p107_p1 }
   0x8   :  { %p110_p4 = pnand %p109_p3, %p103_p0 }
   0xa   :  { %113 = shalt.err (!%p110_p4)
}
   0xb   :  { %17 = dma.hbm_to_vmem [thread:$0]  %s156_s0, 1024, %s15_s7, [#allocation3]  }
   0xc   :  { %134 = dma.done.wait [#allocation3], 1024  }
   0xd   :  { %135 = vsyncadd [#allocation3], 4294966272  ;;  %v21_v0 = vld [vmem:[#allocation2] sm:$0xff]  ;;  %v22_v1 = vld [vmem:[#allocation2 + $0x8] sm:$0xff]  ;;  %s139_s0 = smov [#allocation5]  }
   0xe   :  { %v23_v2 = vld [vmem:[#allocation2 + $0x10] sm:$0xff]  ;;  %v29_v3 = vadd.f32 3.0, %v21_v0  ;;  %v30_v4 = vadd.f32 3.0, %v22_v1  ;;  %v24_v6 = vld [vmem:[#allocation2 + $0x18] sm:$0xff]  ;;  %v25_v7 = vld [vmem:[#allocation2 + $0x20] sm:$0xff]  ;;  %s83_s11 = sshll.u32 %s139_s0, 4  ;;  %s84_s11 = int_to_ptr.vmem [resolvable:$true] %s83_s11 }
   0xf   :  { %v31_v5 = vadd.f32 3.0, %v23_v2  ;;  %v26_v8 = vld [vmem:[#allocation2 + $0x28] sm:$0xff]  ;;  %v32_v9 = vadd.f32 3.0, %v24_v6  ;;  %v33_v10 = vadd.f32 3.0, %v25_v7  ;;  %v27_v12 = vld [vmem:[#allocation2 + $0x30] sm:$0xff]  ;;  %v28_v13 = vld [vmem:[#allocation2 + $0x38] sm:$0xff]  ;;  %p119_p6 = scmp.lt.s32.totalorder %s84_s11, %s84_s11 }
  0x10   :  { %v34_v11 = vadd.f32 3.0, %v26_v8  ;;  %v37_v14 = vmax.f32 %v29_v3, 0.0  ;;  %v38_v15 = vmax.f32 %v30_v4, 0.0  ;;  %v35_v17 = vadd.f32 3.0, %v27_v12  ;;  %s114_s12 = scalar_lea.vmem %s84_s11, 1024 }
  0x11   :  { %v39_v16 = vmax.f32 %v31_v5, 0.0  ;;  %v40_v18 = vmax.f32 %v32_v9, 0.0  ;;  %v41_v19 = vmax.f32 %v33_v10, 0.0  ;;  %v36_v21 = vadd.f32 3.0, %v28_v13  ;;  %p115_p5 = scmp.ne.s32.totalorder %s84_s11, %s114_s12  ;;  %p120_p7 = scmp.lt.s32.totalorder %s114_s12, %s114_s12 }
  0x12   :  { %v42_v20 = vmax.f32 %v34_v11, 0.0  ;;  %v45_v22 = vmin.f32 %v37_v14, 6.0  ;;  %v46_v23 = vmin.f32 %v38_v15, 6.0  ;;  %v43_v25 = vmax.f32 %v35_v17, 0.0 }
  0x13   :  { %v47_v24 = vmin.f32 %v39_v16, 6.0  ;;  %v48_v26 = vmin.f32 %v40_v18, 6.0  ;;  %v49_v27 = vmin.f32 %v41_v19, 6.0  ;;  %v44_v29 = vmax.f32 %v36_v21, 0.0  ;;  %p121_p8 = por %p120_p7, %p119_p6 }
  0x14   :  { %v50_v28 = vmin.f32 %v42_v20, 6.0  ;;  %v53_v30 = vmul.f32 0.16666667, %v45_v22  ;;  %v54_v31 = vmul.f32 0.16666667, %v46_v23  ;;  %v51_v39 = vmin.f32 %v43_v25, 6.0 }
  0x15   :  { %v55_v32 = vmul.f32 0.16666667, %v47_v24  ;;  %v56_v33 = vmul.f32 0.16666667, %v48_v26  ;;  %v57_v34 = vmul.f32 0.16666667, %v49_v27  ;;  %p122_p9 = pnand %p121_p8, %p115_p5 }
  0x16   :  { %v58_v35 = vmul.f32 0.16666667, %v50_v28  ;;  %v61_v36 = vmul.f32 %v53_v30, %v21_v0  ;;  %v62_v37 = vmul.f32 %v54_v31, %v22_v1  ;;  %v52_v43 = vmin.f32 %v44_v29, 6.0 }
  0x17   :  { %v63_v38 = vmul.f32 %v55_v32, %v23_v2  ;;  %v64_v40 = vmul.f32 %v56_v33, %v24_v6  ;;  %v65_v41 = vmul.f32 %v57_v34, %v25_v7  ;;  %v59_v44 = vmul.f32 0.16666667, %v51_v39 }
  0x18   :  { %v66_v42 = vmul.f32 %v58_v35, %v26_v8  ;;  %69 = vst [vmem:[#allocation5] sm:$0xff] %v61_v36  ;;  %70 = vst [vmem:[#allocation5 + $0x8] sm:$0xff] %v62_v37  ;;  %v60_v45 = vmul.f32 0.16666667, %v52_v43 }
  0x19   :  { %71 = vst [vmem:[#allocation5 + $0x10] sm:$0xff] %v63_v38  ;;  %72 = vst [vmem:[#allocation5 + $0x18] sm:$0xff] %v64_v40  ;;  %v67_v46 = vmul.f32 %v59_v44, %v27_v12 }
  0x1a   :  { %73 = vst [vmem:[#allocation5 + $0x20] sm:$0xff] %v65_v41  ;;  %74 = vst [vmem:[#allocation5 + $0x28] sm:$0xff] %v66_v42  ;;  %v68_v47 = vmul.f32 %v60_v45, %v28_v13 }
  0x1b   :  { %75 = vst [vmem:[#allocation5 + $0x30] sm:$0xff] %v67_v46 }
  0x1c   :  { %76 = vst [vmem:[#allocation5 + $0x38] sm:$0xff] %v68_v47 }
  0x1d   :  { %125 = shalt.err (!%p122_p9)
}
  0x1e   :  { %86 = dma.vmem_to_hbm [thread:$0]  %s84_s11, 1024, %s157_s1, [#allocation4]  }
  0x1f   :  { %136 = dma.done.wait [#allocation4], 1024  }
  0x20   :  { %137 = vsyncadd [#allocation4], 4294966272 }
  0x21   :  { %90 = vsyncpa [#allocation3], 1 }
  0x22   :  { %91 = vsyncpa [#allocation4], 1 }

</bundles_post_ra>
